<compile_context>
chip_gen: v5e
topology: v5e:2x2
jax: 0.10.0
libtpu: 0.0.40
codegen_flags: <defaults>
</compile_context>

<pallas_src>
import jax
import jax.numpy as jnp
from jax.experimental import pallas as pl
from jax.experimental.pallas import tpu as pltpu


def _conv_unshuffle_kernel(body_ref, halo_ref, w_ref, o_ref, xc_ref):
    """One (batch, row-tile) grid step.

    body_ref: (1, M, C4)    M = TR*Qp flattened rows of the folded input
    halo_ref: (1, Qp, C4)   next folded row (1-row halo, re-read from HBM)
    w_ref:    (K4, CO4p)    folded + K-concatenated weights, K4 = 4*C4
    o_ref:    (1, M, CO4p)  lane-dense output rows (garbage cols dropped later)
    xc_ref:   (M, K4)       VMEM scratch: K-concatenated shifted input
    """
    M = body_ref.shape[1]
    Qp = halo_ref.shape[1]
    C4 = body_ref.shape[2]

    # Build the K-concatenated LHS: tap group g=(a,b) is the input shifted by
    # s = a*Qp + b flat rows -- contiguous sublane-shifted copies feeding a
    # single wide-K matmul instead of four narrow ones.
    for g, s in enumerate((0, 1, Qp, Qp + 1)):
        c0, c1 = g * C4, (g + 1) * C4
        nb = max(M - s, 0)                       # rows sourced from the body
        if nb:
            xc_ref[0:nb, c0:c1] = body_ref[0, s:s + nb, :]
        hs = max(s - M, 0)                       # halo source start row
        nh = min(Qp - hs, M - nb)                # rows sourced from the halo
        if nh > 0:
            xc_ref[nb:nb + nh, c0:c1] = halo_ref[0, hs:hs + nh, :]
        if nb + nh < M:
            # Remaining (<=1) rows only feed dropped garbage output columns.
            xc_ref[nb + nh:M, c0:c1] = jnp.zeros((M - nb - nh, C4),
                                                 xc_ref.dtype)

    o_ref[0] = jnp.dot(xc_ref[...], w_ref[...],
                       preferred_element_type=jnp.float32).astype(o_ref.dtype)


def _round_up(x, m):
    return ((x + m - 1) // m) * m


def _divisors_desc(n):
    return [d for d in range(n, 0, -1) if n % d == 0]


def _vmem_need_bytes(tr, qp, c4, co4p, itemsize):
    m = tr * qp
    k4 = 4 * c4
    body = m * c4 * itemsize
    halo = qp * c4 * itemsize
    w = k4 * co4p * itemsize
    out = m * co4p * itemsize
    xc = m * k4 * itemsize
    acc = m * co4p * 4            # f32 matmul result before the bf16 cast
    # double-buffered blocks + scratch + result/temporaries + headroom
    return 2 * (body + halo + out + w) + xc + acc + body + (2 << 20)


def _vmem_budget_bytes():
    cap = 64 << 20                # conservative default (v7x physical VMEM)
    try:
        info = pltpu.get_tpu_info()
        cap = int(getattr(info, "vmem_capacity_bytes", cap))
    except Exception:
        pass
    # Headroom for compiler scratch / semaphores; big tiles allowed on the
    # 128 MiB parts (v5e/v6e) while staying well under v7x's 64 MiB.
    return int(max(16 << 20, min(cap - (12 << 20), 96 << 20)))


def _pick_row_tile(ho, batch, qp, c4, co4p, itemsize, budget):
    divs = _divisors_desc(ho)
    fits = [d for d in divs
            if _vmem_need_bytes(d, qp, c4, co4p, itemsize) <= min(budget, 48 << 20)]
    if not fits:
        fits = [d for d in divs
                if _vmem_need_bytes(d, qp, c4, co4p, itemsize) <= budget] or [1]
    if batch == 1:                # keep >= 2 grid blocks so both v7x TCs work
        multi = [d for d in fits if ho // d >= 2]
        if multi:
            return multi[0]
    return fits[0]


def _fold_weight(weight, co4p, dtype):
    """conv3x3 + PixelUnshuffle(2) == stride-2 4x4 conv; fold its taps onto the
    2x2 parity shifts of the folded input and K-concatenate the 4 shifts.
    Returns (16*C_in, co4p) with output channel order oc = co*4 + i*2 + j."""
    c_out, c_in = weight.shape[0], weight.shape[1]
    co4 = 4 * c_out
    wt = jnp.transpose(weight, (2, 3, 1, 0))                   # (3,3,Cin,Cout)
    w4 = jnp.zeros((4, 4, c_in, c_out, 2, 2), wt.dtype)
    for i in range(2):            # output-pixel parity inside each 2x2 block
        for j in range(2):
            w4 = w4.at[i:i + 3, j:j + 3, :, :, i, j].set(wt)
    w4 = w4.reshape(4, 4, c_in, co4)                           # oc = co*4+i*2+j
    wcat = (w4.reshape(2, 2, 2, 2, c_in, co4)
              .transpose(0, 2, 1, 3, 4, 5)                     # (a,b,i',j',C,CO4)
              .reshape(16 * c_in, co4))
    return jnp.pad(wcat, ((0, 0), (0, co4p - co4))).astype(dtype)


@jax.jit
def downsample(x, weight):
    """Conv2d(C -> C//2, 3x3, stride 1, pad 1, no bias) + PixelUnshuffle(2).

    x: (B, C, H, W); weight: (C//2, C, 3, 3)  ->  (B, 2*C, H//2, W//2),
    matching the PyTorch module (including channel ordering)."""
    B, C, H, W = x.shape
    C_out = weight.shape[0]
    assert weight.shape == (C_out, C, 3, 3)
    assert H % 2 == 0 and W % 2 == 0, "PixelUnshuffle(2) needs even H, W"

    HO, WO = H // 2, W // 2
    Qp = _round_up(WO + 1, 8)          # folded width incl. conv pad, 8-aligned
    P = HO + 1                         # folded height incl. conv pad
    C4, K4 = 4 * C, 16 * C
    CO4 = 4 * C_out
    CO4p = _round_up(CO4, 128)         # lane-dense (unmasked) output stores
    cdt = jnp.bfloat16                 # MXU operands; accumulation stays f32

    # ---- Input: NCHW -> padded NHWC -> space-to-depth(2) folded onto lanes,
    # flattened to (rows, 4*C) so the 2x2 tap shifts become sublane shifts of
    # {0, 1, Qp, Qp+1}.  Replaces the NCHW->NHWC transpose needed anyway.
    # TODO(synk): move this fold into the kernel (strided DMA from the NCHW
    # tensor) to guarantee a single HBM pass independent of XLA fusion.
    xh = jnp.transpose(x, (0, 2, 3, 1)).astype(cdt)
    xp = jnp.pad(xh, ((0, 0), (1, 1), (1, 2 * Qp - W - 1), (0, 0)))
    xf = (xp.reshape(B, P, 2, Qp, 2, C)
            .transpose(0, 1, 3, 2, 4, 5)
            .reshape(B, P * Qp, C4))

    wbig = _fold_weight(weight, CO4p, cdt)                     # (K4, CO4p)

    itemsize = 2
    budget = _vmem_budget_bytes()
    TR = _pick_row_tile(HO, B, Qp, C4, CO4p, itemsize, budget)
    R = HO // TR
    M = TR * Qp
    need = _vmem_need_bytes(TR, Qp, C4, CO4p, itemsize)
    vmem_limit = int(min(max(need, 16 << 20), budget))

    out = pl.pallas_call(
        _conv_unshuffle_kernel,
        out_shape=jax.ShapeDtypeStruct((B, HO * Qp, CO4p), cdt),
        grid=(B, R),
        in_specs=[
            pl.BlockSpec((1, M, C4), lambda b, r: (b, r, 0)),              # body
            pl.BlockSpec((1, Qp, C4), lambda b, r: (b, (r + 1) * TR, 0)),  # halo
            pl.BlockSpec((K4, CO4p), lambda b, r: (0, 0)),                 # weights
        ],
        out_specs=pl.BlockSpec((1, M, CO4p), lambda b, r: (b, r, 0)),
        scratch_shapes=[pltpu.VMEM((M, K4), cdt)],
        compiler_params=pltpu.CompilerParams(
            dimension_semantics=("parallel", "parallel"),
            vmem_limit_bytes=vmem_limit,
        ),
    )(xf, xf, wbig)

    # Drop padded/garbage columns and channels inside the (required anyway)
    # layout change back to NCHW; channel order already matches PixelUnshuffle.
    y = out.reshape(B, HO, Qp, CO4p)[:, :, :WO, :CO4]
    return jnp.transpose(y, (0, 3, 1, 2)).astype(x.dtype)


def _reference(x, weight):
    y = jax.lax.conv_general_dilated(
        x, weight, window_strides=(1, 1), padding=((1, 1), (1, 1)),
        dimension_numbers=("NCHW", "OIHW", "NCHW"),
        precision=jax.lax.Precision.HIGHEST)
    B, CO, H, W = y.shape
    y = y.reshape(B, CO, H // 2, 2, W // 2, 2).transpose(0, 1, 3, 5, 2, 4)
    return y.reshape(B, CO * 4, H // 2, W // 2)


if __name__ == "__main__":
    key = jax.random.PRNGKey(0)
    B, n_feat, H, W = 2, 32, 16, 16

    kx, kw = jax.random.split(key)
    x = jax.random.normal(kx, (B, n_feat, H, W), dtype=jnp.float32)
    weight = jax.random.normal(kw, (n_feat // 2, n_feat, 3, 3), dtype=jnp.float32)
    weight = weight / (3.0 * (n_feat ** 0.5))    # conv-like init scale

    y = jax.block_until_ready(downsample(x, weight))

    # Reference on bf16-rounded operands (the kernel feeds the MXU in bf16
    # with f32 accumulation), computed with a HIGHEST-precision f32 conv.
    xr = x.astype(jnp.bfloat16).astype(jnp.float32)
    wr = weight.astype(jnp.bfloat16).astype(jnp.float32)
    y_ref = _reference(xr, wr)

    assert y.shape == (B, 2 * n_feat, H // 2, W // 2), y.shape
    err = float(jnp.max(jnp.abs(y.astype(jnp.float32) - y_ref)))
    assert jnp.allclose(y.astype(jnp.float32), y_ref, atol=3e-2, rtol=3e-2), err

    print("KERNEL_OK")
</pallas_src>

<mosaic_0001>
module attributes {stable_mosaic.version = 11 : i64} {
  func.func @_conv_unshuffle_kernel(%arg0: i32, %arg1: i32, %arg2: memref<1x128x128xbf16, #tpu.memory_space<vmem>>, %arg3: memref<1x16x128xbf16, #tpu.memory_space<vmem>>, %arg4: memref<512x128xbf16, #tpu.memory_space<vmem>>, %arg5: memref<1x128x128xbf16, #tpu.memory_space<vmem>>, %arg6: memref<128x512xbf16, #tpu.memory_space<vmem>>) attributes {dimension_semantics = [#tpu.dimension_semantics<parallel>, #tpu.dimension_semantics<parallel>], iteration_bounds = array<i64: 2, 1>, scalar_prefetch = 0 : i64, scratch_operands = 1 : i64, tpu.core_type = #tpu.core_type<tc>, window_params = [{transform_indices = @transform_0, window_bounds = array<i64: 1, 128, 128>}, {transform_indices = @transform_1, window_bounds = array<i64: 1, 16, 128>}, {pipeline_mode = #tpu.pipeline_mode<synchronous>, transform_indices = @transform_2, window_bounds = array<i64: 512, 128>}, {transform_indices = @transform_3, window_bounds = array<i64: 1, 128, 128>}]} {
    %c0 = arith.constant 0 : index
    %c0_0 = arith.constant 0 : index
    %c0_1 = arith.constant 0 : index
    %0 = vector.load %arg2[%c0, %c0_0, %c0_1] : memref<1x128x128xbf16, #tpu.memory_space<vmem>>, vector<1x128x128xbf16>
    %1 = vector.shape_cast %0 : vector<1x128x128xbf16> to vector<128x128xbf16>
    %c0_2 = arith.constant 0 : index
    %c0_3 = arith.constant 0 : index
    %2 = vector.load %arg6[%c0_2, %c0_3] : memref<128x512xbf16, #tpu.memory_space<vmem>>, vector<128x128xbf16>
    tpu.vector_store %arg6[%c0_2, %c0_3], %1 {strides = array<i32>} : memref<128x512xbf16, #tpu.memory_space<vmem>>, vector<128x128xbf16>,
    %c0_4 = arith.constant 0 : index
    %c1 = arith.constant 1 : index
    %c0_5 = arith.constant 0 : index
    %3 = vector.load %arg2[%c0_4, %c1, %c0_5] : memref<1x128x128xbf16, #tpu.memory_space<vmem>>, vector<1x127x128xbf16>
    %4 = vector.shape_cast %3 : vector<1x127x128xbf16> to vector<127x128xbf16>
    %c0_6 = arith.constant 0 : index
    %c128 = arith.constant 128 : index
    %5 = vector.load %arg6[%c0_6, %c128] : memref<128x512xbf16, #tpu.memory_space<vmem>>, vector<127x128xbf16>
    tpu.vector_store %arg6[%c0_6, %c128], %4 {strides = array<i32>} : memref<128x512xbf16, #tpu.memory_space<vmem>>, vector<127x128xbf16>,
    %c0_7 = arith.constant 0 : index
    %c0_8 = arith.constant 0 : index
    %c0_9 = arith.constant 0 : index
    %6 = vector.load %arg3[%c0_7, %c0_8, %c0_9] : memref<1x16x128xbf16, #tpu.memory_space<vmem>>, vector<1x1x128xbf16>
    %7 = vector.shape_cast %6 : vector<1x1x128xbf16> to vector<1x128xbf16>
    %c127 = arith.constant 127 : index
    %c128_10 = arith.constant 128 : index
    %8 = vector.load %arg6[%c127, %c128_10] : memref<128x512xbf16, #tpu.memory_space<vmem>>, vector<1x128xbf16>
    tpu.vector_store %arg6[%c127, %c128_10], %7 {strides = array<i32>} : memref<128x512xbf16, #tpu.memory_space<vmem>>, vector<1x128xbf16>,
    %c0_11 = arith.constant 0 : index
    %c16 = arith.constant 16 : index
    %c0_12 = arith.constant 0 : index
    %9 = vector.load %arg2[%c0_11, %c16, %c0_12] : memref<1x128x128xbf16, #tpu.memory_space<vmem>>, vector<1x112x128xbf16>
    %10 = vector.shape_cast %9 : vector<1x112x128xbf16> to vector<112x128xbf16>
    %c0_13 = arith.constant 0 : index
    %c256 = arith.constant 256 : index
    %11 = vector.load %arg6[%c0_13, %c256] : memref<128x512xbf16, #tpu.memory_space<vmem>>, vector<112x128xbf16>
    tpu.vector_store %arg6[%c0_13, %c256], %10 {strides = array<i32>} : memref<128x512xbf16, #tpu.memory_space<vmem>>, vector<112x128xbf16>,
    %c0_14 = arith.constant 0 : index
    %c0_15 = arith.constant 0 : index
    %c0_16 = arith.constant 0 : index
    %12 = vector.load %arg3[%c0_14, %c0_15, %c0_16] : memref<1x16x128xbf16, #tpu.memory_space<vmem>>, vector<1x16x128xbf16>
    %13 = vector.shape_cast %12 : vector<1x16x128xbf16> to vector<16x128xbf16>
    %c112 = arith.constant 112 : index
    %c256_17 = arith.constant 256 : index
    %14 = vector.load %arg6[%c112, %c256_17] : memref<128x512xbf16, #tpu.memory_space<vmem>>, vector<16x128xbf16>
    tpu.vector_store %arg6[%c112, %c256_17], %13 {strides = array<i32>} : memref<128x512xbf16, #tpu.memory_space<vmem>>, vector<16x128xbf16>,
    %c0_18 = arith.constant 0 : index
    %c17 = arith.constant 17 : index
    %c0_19 = arith.constant 0 : index
    %15 = vector.load %arg2[%c0_18, %c17, %c0_19] : memref<1x128x128xbf16, #tpu.memory_space<vmem>>, vector<1x111x128xbf16>
    %16 = vector.shape_cast %15 : vector<1x111x128xbf16> to vector<111x128xbf16>
    %c0_20 = arith.constant 0 : index
    %c384 = arith.constant 384 : index
    %17 = vector.load %arg6[%c0_20, %c384] : memref<128x512xbf16, #tpu.memory_space<vmem>>, vector<111x128xbf16>
    tpu.vector_store %arg6[%c0_20, %c384], %16 {strides = array<i32>} : memref<128x512xbf16, #tpu.memory_space<vmem>>, vector<111x128xbf16>,
    %c0_21 = arith.constant 0 : index
    %c0_22 = arith.constant 0 : index
    %c0_23 = arith.constant 0 : index
    %18 = vector.load %arg3[%c0_21, %c0_22, %c0_23] : memref<1x16x128xbf16, #tpu.memory_space<vmem>>, vector<1x16x128xbf16>
    %19 = vector.shape_cast %18 : vector<1x16x128xbf16> to vector<16x128xbf16>
    %c111 = arith.constant 111 : index
    %c384_24 = arith.constant 384 : index
    %20 = vector.load %arg6[%c111, %c384_24] : memref<128x512xbf16, #tpu.memory_space<vmem>>, vector<16x128xbf16>
    tpu.vector_store %arg6[%c111, %c384_24], %19 {strides = array<i32>} : memref<128x512xbf16, #tpu.memory_space<vmem>>, vector<16x128xbf16>,
    %cst = arith.constant 0.000000e+00 : bf16
    %21 = vector.broadcast %cst : bf16 to vector<1x128xbf16>
    %c127_25 = arith.constant 127 : index
    %c384_26 = arith.constant 384 : index
    %22 = vector.load %arg6[%c127_25, %c384_26] : memref<128x512xbf16, #tpu.memory_space<vmem>>, vector<1x128xbf16>
    tpu.vector_store %arg6[%c127_25, %c384_26], %21 {strides = array<i32>} : memref<128x512xbf16, #tpu.memory_space<vmem>>, vector<1x128xbf16>,
    %c0_27 = arith.constant 0 : index
    %c0_28 = arith.constant 0 : index
    %23 = vector.load %arg6[%c0_27, %c0_28] : memref<128x512xbf16, #tpu.memory_space<vmem>>, vector<128x512xbf16>
    %c0_29 = arith.constant 0 : index
    %c0_30 = arith.constant 0 : index
    %24 = vector.load %arg4[%c0_29, %c0_30] : memref<512x128xbf16, #tpu.memory_space<vmem>>, vector<512x128xbf16>
    %cst_31 = arith.constant dense<0.000000e+00> : vector<128x128xf32>
    %25 = tpu.matmul %23, %24, %cst_31 {dimension_numbers = #tpu.dot_dimension_numbers<[1], [0], [0], [1], [0, 0, 1, 1], [], []>} : vector<128x512xbf16>, vector<512x128xbf16>, vector<128x128xf32> -> vector<128x128xf32>
    %26 = arith.truncf %25 : vector<128x128xf32> to vector<128x128xbf16>
    %c0_32 = arith.constant 0 : index
    %c0_33 = arith.constant 0 : index
    %c0_34 = arith.constant 0 : index
    %27 = vector.load %arg5[%c0_32, %c0_33, %c0_34] : memref<1x128x128xbf16, #tpu.memory_space<vmem>>, vector<1x128x128xbf16>
    %28 = vector.shape_cast %27 : vector<1x128x128xbf16> to vector<128x128xbf16>
    %29 = vector.shape_cast %26 : vector<128x128xbf16> to vector<1x128x128xbf16>
    tpu.vector_store %arg5[%c0_32, %c0_33, %c0_34], %29 {strides = array<i32>} : memref<1x128x128xbf16, #tpu.memory_space<vmem>>, vector<1x128x128xbf16>,
    return
  }
  func.func @transform_0(%arg0: i32, %arg1: i32) -> (i32, i32, i32) {
    %c0_i32 = arith.constant 0 : i32
    %c0_i32_0 = arith.constant 0 : i32
    return %arg0, %arg1, %c0_i32 : i32, i32, i32
  }
  func.func @transform_1(%arg0: i32, %arg1: i32) -> (i32, i32, i32) {
    %c1_i32 = arith.constant 1 : i32
    %0 = arith.addi %arg1, %c1_i32 : i32
    %c8_i32 = arith.constant 8 : i32
    %1 = arith.muli %0, %c8_i32 : i32
    %c0_i32 = arith.constant 0 : i32
    %c0_i32_0 = arith.constant 0 : i32
    return %arg0, %1, %c0_i32 : i32, i32, i32
  }
  func.func @transform_2(%arg0: i32, %arg1: i32) -> (i32, i32) {
    %c0_i32 = arith.constant 0 : i32
    %c0_i32_0 = arith.constant 0 : i32
    %c0_i32_1 = arith.constant 0 : i32
    return %c0_i32, %c0_i32_0 : i32, i32
  }
  func.func @transform_3(%arg0: i32, %arg1: i32) -> (i32, i32, i32) {
    %c0_i32 = arith.constant 0 : i32
    %c0_i32_0 = arith.constant 0 : i32
    return %arg0, %arg1, %c0_i32 : i32, i32, i32
  }
}

</mosaic_0001>

<bundles_post_ra>
// kernel: downsample.1
= control target key start
LH: loop header
LB: loop body
LE: loop exit
PB: predicated region body
PF: predicated region fallthrough
CT: control target
= control target key end

     0   :  { %s2021_s12 = smov 0   ;;  %s2023_s13 = smov 0   ;;  %s2351_s0 = inlined_call_operand.vmem [shape: bf16[2,144,128], index: 0, kind: input, shape index: {}, may-alias: {0,1}]   ;;  %s2352_s1 = inlined_call_operand.vmem [shape: bf16[2,144,128], index: 1, kind: input, shape index: {}, may-alias: {0,1}]   ;;  %s2353_s2 = inlined_call_operand.vmem [shape: bf16[512,128], index: 2, kind: input, shape index: {}]   ;;  %s2354_s3 = inlined_call_operand.vmem [shape: bf16[2,128,128], index: 3, kind: output, shape index: {}]  }
   0x1   :  { %s2025_s14 = smov 0  }
   0x2 LB: > { %s25_s15 = sadd.s32 1, %s1995_s13  ;;  %p1573_p0 = scmp.ge.s32.totalorder %s1999_s14, 1  ;;  %s1999_s14 = sphi %s2025_s14, %s13_s14   ;;  %s1995_s13 = sphi %s2023_s13, %s2362_s13   ;;  %s1991_s12 = sphi %s2021_s12, %s2361_s12  }
   0x3   : > { %p27_p1 = scmp.ge.s32.totalorder %s25_s15, 2  ;;  %p191_p2 = scmp.lt.s32.totalorder %s1999_s14, 3 }
   0x5   : > { %s2364_s15 = smov (%p27_p1, %s25_s15), 0  ;;  %p192_p3 = pnand %p1573_p0, %p191_p2 }
   0x6   : > { %p243_p4 = scmp.lt.s32.totalorder (!%p192_p3), %s1991_s12, 1 }
   0x7   : > { %195 = sbr.rel (%p192_p3) target bundleno = 305 (0x131), region = 32 }
   0xc   : > { %v1878_v0 = vld [vmem:[%s2353_s2 + $0x38] sm:$0xff]  ;;  %v1877_v4 = vld [vmem:[%s2353_s2 + $0x30] sm:$0xff]  ;;  %s2366_s12 = smov (!%p243_p4, %s1991_s12), 1  ;;  %v1876_v8 = vld [vmem:[%s2353_s2 + $0x28] sm:$0xff]  ;;  %vm329_vm0 = vsmask.f32 3328 }
   0xd   : > { %v1886_v1 = vld [vmem:[%s2353_s2 + $0x78] sm:$0xff]  ;;  %1236 = vmatpush.bf16.msra.mxu0 %v1878_v0  ;;  %v1885_v5 = vld [vmem:[%s2353_s2 + $0x70] sm:$0xff]  ;;  %s1950_s5 = smul.u32 72, %s2366_s12  ;;  %v1884_v9 = vld [vmem:[%s2353_s2 + $0x68] sm:$0xff]  ;;  %vm330_vm1 = vsmask.f32 7440 }
   0xe   : > { %v1894_v2 = vld [vmem:[%s2353_s2 + $0xb8] sm:$0xff]  ;;  %1285 = vmatpush.bf16.msra.mxu1 %v1886_v1  ;;  %v1893_v6 = vld [vmem:[%s2353_s2 + $0xb0] sm:$0xff]  ;;  %v1892_v10 = vld [vmem:[%s2353_s2 + $0xa8] sm:$0xff]  ;;  %vm522_vm3 = vcmask 1043456   ;;  %vm533_vm5 = vcmask 1043459  }
   0xf   : > { %v1902_v3 = vld [vmem:[%s2353_s2 + $0xf8] sm:$0xff]  ;;  %1334 = vmatpush.bf16.msra.mxu2 %v1894_v2  ;;  %v1901_v7 = vld [vmem:[%s2353_s2 + $0xf0] sm:$0xff]  ;;  %v1900_v11 = vld [vmem:[%s2353_s2 + $0xe8] sm:$0xff]  ;;  %s2083_s20 = scalar_lea.vmem %s2351_s0, %s1950_s5  ;;  %s1837_s18 = sadd.s32 64, %s1950_s5  ;;  %vm534_vm6 = vsmask.f32 7950 }
  0x10   : > { %1383 = vmatpush.bf16.msra.mxu3 %v1902_v3  ;;  %v1875_v12 = vld [vmem:[%s2353_s2 + $0x20] sm:$0xff]  ;;  %v1874_v19 = vld [vmem:[%s2353_s2 + $0x18] sm:$0xff]  ;;  %v315_v22 = vld [vmem:[%s2083_s20 + $0x8] sm:$0xf]  ;;  %s2284_s5 = scalar_lea.vmem %s2352_s1, %s1837_s18 }
  0x11   : > { %1237 = vmatpush.bf16.msra.mxu0 %v1877_v4  ;;  %v1883_v13 = vld [vmem:[%s2353_s2 + $0x60] sm:$0xff]  ;;  %v1882_v20 = vld [vmem:[%s2353_s2 + $0x58] sm:$0xff]  ;;  %v539_v29 = vld [vmem:[%s2083_s20 + $0x8] sm:$0xf]  ;;  %v352_v30 = vshll.u32 %v315_v22, 16  ;;  %v356_v31 = vshrl.u32 %v315_v22, 16 }
  0x12   : > { %1286 = vmatpush.bf16.msra.mxu1 %v1885_v5  ;;  %v1891_v14 = vld [vmem:[%s2353_s2 + $0xa0] sm:$0xff]  ;;  %v1890_v23 = vld [vmem:[%s2353_s2 + $0x98] sm:$0xff]  ;;  %v540_v32 = vld [vmem:[%s2083_s20 + $0xc] sm:$0xf]  ;;  %553 = vst [vmem:[#allocation2 + $0x8] sm:$0xf] %v539_v29 }
  0x13   : > { %1335 = vmatpush.bf16.msra.mxu2 %v1893_v6  ;;  %v1899_v15 = vld [vmem:[%s2353_s2 + $0xe0] sm:$0xff]  ;;  %v1898_v24 = vld [vmem:[%s2353_s2 + $0xd8] sm:$0xff]  ;;  %554 = vst [vmem:[#allocation2 + $0x18] sm:$0xf] %v540_v32  ;;  %v354_v37 = vrot.slane %v352_v30, 5  ;;  %v358_v40 = vrot.slane %v356_v31, 4  ;;  %vm2127_vm2 = vmor %vm329_vm0, %vm330_vm1 }
  0x14   : > { %1384 = vmatpush.bf16.msra.mxu3 %v1901_v7  ;;  %v281_v16 = vld [vmem:[%s2083_s20] sm:$0xf]  ;;  %v282_v17 = vld [vmem:[%s2083_s20 + $0x4] sm:$0xf]  ;;  %v571_v38 = vld [vmem:[%s2083_s20 + $0x8] sm:$0xf] }
  0x15   : > { %1238 = vmatpush.bf16.msra.mxu0 %v1876_v8  ;;  %297 = vst [vmem:[#allocation2] sm:$0xf] %v281_v16  ;;  %v313_v18 = vld [vmem:[%s2083_s20] sm:$0xf]  ;;  %v314_v21 = vld [vmem:[%s2083_s20 + $0x4] sm:$0xf]  ;;  %v359_v5 = vor.u32 %v358_v40, %v354_v37  ;;  %vm2264_vm4 = vmand %vm522_vm3, %vm329_vm0 }
  0x16   : > { %1287 = vmatpush.bf16.msra.mxu1 %v1884_v9  ;;  %298 = vst [vmem:[#allocation2 + $0x10] sm:$0xf] %v282_v17  ;;  %v333_v25 = vshrl.u32 %v313_v18, 16  ;;  %v336_v26 = vshll.u32 %v313_v18, 16  ;;  %v342_v27 = vshll.u32 %v314_v21, 16  ;;  %v346_v28 = vshrl.u32 %v314_v21, 16  ;;  %vm2300_vm7 = vmand %vm533_vm5, %vm534_vm6 }
  0x17   : > { %1336 = vmatpush.bf16.msra.mxu2 %v1892_v10  ;;  %v572_v39 = vld [vmem:[%s2083_s20 + $0xc] sm:$0xf]  ;;  %v1873_v41 = vld [vmem:[%s2353_s2 + $0x10] sm:$0xff]  ;;  %v586_v45 = vshrl.u32 %v571_v38, 16  ;;  %v589_v46 = vshll.u32 %v571_v38, 16  ;;  %v1887_v21 = vld [vmem:[%s2353_s2 + $0x80] sm:$0xff] }
  0x18   : > { %1385 = vmatpush.bf16.msra.mxu3 %v1900_v11  ;;  %v335_v33 = vrot.slane %v333_v25, 4  ;;  %v338_v34 = vrot.slane %v336_v26, 5  ;;  %v344_v35 = vrot.slane %v342_v27, 5  ;;  %v348_v36 = vrot.slane %v346_v28, 4  ;;  %v573_v44 = vld [vmem:[%s2083_s20 + $0x10] sm:$0xf] }
  0x19   : > { %1239 = vmatpush.bf16.msra.mxu0 %v1875_v12  ;;  %v1881_v47 = vld [vmem:[%s2353_s2 + $0x50] sm:$0xff]  ;;  %v595_v49 = vshll.u32 %v572_v39, 16  ;;  %v599_v50 = vshrl.u32 %v572_v39, 16  ;;  %v605_v51 = vshll.u32 %v573_v44, 16  ;;  %v283_v52 = vld [vmem:[%s2083_s20 + $0x8] sm:$0xf] }
  0x1a   : > { %1288 = vmatpush.bf16.msra.mxu1 %v1883_v13  ;;  %v339_v42 = vor.u32 %v338_v34, %v335_v33  ;;  %v349_v43 = vor.u32 %v348_v36, %v344_v35  ;;  %v1889_v53 = vld [vmem:[%s2353_s2 + $0x90] sm:$0xff]  ;;  %v588_v57 = vrot.slane %v586_v45, 4  ;;  %v591_v58 = vrot.slane %v589_v46, 5  ;;  %v1872_v59 = vld [vmem:[%s2353_s2 + $0x8] sm:$0xff]  ;;  %299 = vst [vmem:[#allocation2 + $0x20] sm:$0xf] %v283_v52 }
  0x1b   : > { %1337 = vmatpush.bf16.msra.mxu2 %v1891_v14  ;;  %v1897_v54 = vld [vmem:[%s2353_s2 + $0xd0] sm:$0xff]  ;;  %v1880_v60 = vld [vmem:[%s2353_s2 + $0x48] sm:$0xff]  ;;  %v597_v61 = vrot.slane %v595_v49, 5  ;;  %v601_v62 = vrot.slane %v599_v50, 4  ;;  %v609_v63 = vshrl.u32 %v573_v44, 16  ;;  %v607_v8 = vrot.slane %v605_v51, 5 }
  0x1c   : > { %1386 = vmatpush.bf16.msra.mxu3 %v1899_v15  ;;  %v340_v55 = vrot.slane %v339_v42, 4  ;;  %v350_v56 = vrot.slane %v349_v43, 4  ;;  %v592_v2 = vor.u32 %v591_v58, %v588_v57  ;;  %v284_v3 = vld [vmem:[%s2083_s20 + $0xc] sm:$0xf]  ;;  %v2154_v9 = vld [vmem:[%s2083_s20 + $0x10] sm:$0xf] }
  0x1d   : > { %1240 = vmatpush.bf16.msra.mxu0 %v1874_v19  ;;  %v316_v4 = vld [vmem:[%s2083_s20 + $0xc] sm:$0xf]  ;;  %v602_v7 = vor.u32 %v601_v62, %v597_v61  ;;  %v360_v12 = vrot.slane %v359_v5, 4  ;;  %v1871_v14 = vld [vmem:[%s2353_s2] sm:$0xff]  ;;  %v1841_v17 = vld [vmem:[#allocation2 + $0xc] sm:$0xf0] }
  0x1e   : > { %1289 = vmatpush.bf16.msra.mxu1 %v1882_v20  ;;  %v345_v0 = vsel %vm2127_vm2, %v340_v55, %v344_v35  ;;  %v355_v1 = vsel %vm2127_vm2, %v350_v56, %v354_v37  ;;  %v1888_v6 = vld [vmem:[%s2353_s2 + $0x88] sm:$0xff]  ;;  %v593_v11 = vrot.slane %v592_v2, 4  ;;  %v362_v13 = vshll.u32 %v316_v4, 16  ;;  %v1879_v15 = vld [vmem:[%s2353_s2 + $0x40] sm:$0xff]  ;;  %300 = vst [vmem:[#allocation2 + $0x30] sm:$0xf] %v284_v3 }
  0x1f   : > { %1338 = vmatpush.bf16.msra.mxu2 %v1890_v23  ;;  %507 = vst [vmem:[#allocation2 + $0x4] sm:$0xf] %v345_v0  ;;  %v1896_v10 = vld [vmem:[%s2353_s2 + $0xc8] sm:$0xff]  ;;  %v1580_v16 = vld [vmem:[#allocation2] sm:$0xf]  ;;  %v603_v18 = vrot.slane %v602_v7, 4 }
  0x20   : > { %1387 = vmatpush.bf16.msra.mxu3 %v1898_v24  ;;  %508 = vst [vmem:[#allocation2 + $0x14] sm:$0xf] %v355_v1  ;;  %v366_v19 = vshrl.u32 %v316_v4, 16  ;;  %v372_v20 = vshll.u32 %v2154_v9, 16  ;;  %v1895_v22 = vld [vmem:[%s2353_s2 + $0xc0] sm:$0xff]  ;;  %v598_v25 = vsel %vm2127_vm2, %v593_v11, %v597_v61  ;;  %v364_v26 = vrot.slane %v362_v13, 5 }
  0x21   : > { %1241 = vmatpush.bf16.msra.mxu0 %v1873_v41  ;;  %v1588_v23 = vld [vmem:[#allocation2 + $0x8] sm:$0xf]  ;;  %v1842_v24 = vld [vmem:[#allocation2 + $0x14] sm:$0xf0]  ;;  %v541_v27 = vld [vmem:[%s2083_s20 + $0x10] sm:$0xf]  ;;  %v608_v30 = vsel %vm2127_vm2, %v603_v18, %v607_v8  ;;  %v1581_v43 = vor.u32 %v1841_v17, %v1580_v16 }
  0x22   : > { %1290 = vmatpush.bf16.msra.mxu1 %v1881_v47  ;;  %v542_v28 = vld [vmem:[%s2083_s20 + $0x14] sm:$0xf]  ;;  %v611_v29 = vrot.slane %v609_v63, 4  ;;  %738 = vst [vmem:[#allocation2 + $0xc] sm:$0xf] %v598_v25  ;;  %v368_v31 = vrot.slane %v366_v19, 4  ;;  %v365_v34 = vsel %vm2127_vm2, %v360_v12, %v364_v26  ;;  %v1589_v49 = vor.u32 %v1842_v24, %v1588_v23 }
  0x23   : > { %1339 = vmatpush.bf16.msra.mxu2 %v1889_v53  ;;  %v376_v32 = vshrl.u32 %v2154_v9, 16  ;;  %v574_v33 = vld [vmem:[%s2083_s20 + $0x14] sm:$0xf]  ;;  %739 = vst [vmem:[#allocation2 + $0x1c] sm:$0xf] %v608_v30  ;;  %v374_v40 = vrot.slane %v372_v20, 5 }
  0x24   : > { %1388 = vmatpush.bf16.msra.mxu3 %v1897_v54  ;;  %v575_v35 = vld [vmem:[%s2083_s20 + $0x18] sm:$0xf]  ;;  %v612_v36 = vor.u32 %v611_v29, %v607_v8  ;;  %v615_v37 = vshll.u32 %v574_v33, 16  ;;  %v619_v38 = vshrl.u32 %v574_v33, 16  ;;  %v369_v39 = vor.u32 %v368_v31, %v364_v26  ;;  %509 = vst [vmem:[#allocation2 + $0x24] sm:$0xf] %v365_v34 }
  0x25   : > { %1242 = vmatpush.bf16.msra.mxu0 %v1872_v59  ;;  %v625_v41 = vshll.u32 %v575_v35, 16  ;;  %v629_v42 = vshrl.u32 %v575_v35, 16  ;;  %555 = vst [vmem:[#allocation2 + $0x28] sm:$0xf] %v541_v27  ;;  %v285_v55 = vld [vmem:[%s2083_s20 + $0x10] sm:$0xf] }
  0x26   : > { %1291 = vmatpush.bf16.msra.mxu1 %v1880_v60  ;;  %v1839_v44 = vld [vmem:[#allocation2 + $0x4] sm:$0xf]  ;;  %v613_v45 = vrot.slane %v612_v36, 4  ;;  %v617_v46 = vrot.slane %v615_v37, 5  ;;  %v370_v50 = vrot.slane %v369_v39, 4  ;;  %v621_v51 = vrot.slane %v619_v38, 4 }
  0x27   : > { %1340 = vmatpush.bf16.msra.mxu2 %v1888_v6  ;;  %v1582_v47 = vld [vmem:[#allocation2 + $0x10] sm:$0xf0]  ;;  %556 = vst [vmem:[#allocation2 + $0x38] sm:$0xf] %v542_v28  ;;  %v627_v54 = vrot.slane %v625_v41, 5  ;;  %v378_v56 = vrot.slane %v376_v32, 4 }
  0x28   : > { %1389 = vmatpush.bf16.msra.mxu3 %v1896_v10  ;;  %v1585_v52 = vor.u32 %v1839_v44, %v1582_v47  ;;  %v618_v53 = vsel %vm2127_vm2, %v613_v45, %v617_v46  ;;  %v375_v57 = vsel %vm2127_vm2, %v370_v50, %v374_v40  ;;  %v622_v58 = vor.u32 %v621_v51, %v617_v46  ;;  %v286_v59 = vld [vmem:[%s2083_s20 + $0x14] sm:$0xf]  ;;  %v319_v62 = vld [vmem:[%s2083_s20 + $0x18] sm:$0xf]  ;;  %v1596_v16 = vld [vmem:[#allocation2 + $0x20] sm:$0xf] }
  0x29   : > { %1243 = vmatpush.bf16.msra.mxu0 %v1871_v14  ;;  %740 = vst [vmem:[#allocation2 + $0x2c] sm:$0xf] %v618_v53  ;;  %v318_v60 = vld [vmem:[%s2083_s20 + $0x14] sm:$0xf]  ;;  %v1840_v61 = vld [vmem:[#allocation2 + $0xc] sm:$0xf]  ;;  %v379_v63 = vor.u32 %v378_v56, %v374_v40 }
  0x2a   : > { %1292 = vmatpush.bf16.msra.mxu1 %v1879_v15  ;;  %510 = vst [vmem:[#allocation2 + $0x34] sm:$0xf] %v375_v57  ;;  %v1590_v0 = vld [vmem:[#allocation2 + $0x18] sm:$0xf0]  ;;  %v623_v1 = vrot.slane %v622_v58, 4  ;;  %v382_v2 = vshll.u32 %v318_v60, 16 }
  0x2b   : > { %1341 = vmatpush.bf16.msra.mxu2 %v1887_v21  ;;  %301 = vst [vmem:[#allocation2 + $0x40] sm:$0xf] %v285_v55  ;;  %v1593_v3 = vor.u32 %v1840_v61, %v1590_v0  ;;  %v380_v4 = vrot.slane %v379_v63, 4  ;;  %v386_v5 = vshrl.u32 %v318_v60, 16  ;;  %v392_v8 = vshll.u32 %v319_v62, 16 }
  0x2c   : > { %1390 = vmatpush.bf16.msra.mxu3 %v1895_v22  ;;  %1244 = vmatmul.bf16.vlgmr.msra.gmra.mxu0 %v1581_v43  ;;  %302 = vst [vmem:[#allocation2 + $0x50] sm:$0xf] %v286_v59  ;;  %v628_v6 = vsel %vm2127_vm2, %v623_v1, %v627_v54  ;;  %v384_v7 = vrot.slane %v382_v2, 5  ;;  %v396_v9 = vshrl.u32 %v319_v62, 16  ;;  %v631_v11 = vrot.slane %v629_v42, 4 }
  0x2d   : > { %1293 = vmatmul.bf16.vlgmr.msra.gmra.mxu1 %v1585_v52  ;;  %741 = vst [vmem:[#allocation2 + $0x3c] sm:$0xf] %v628_v6  ;;  %v388_v10 = vrot.slane %v386_v5, 4  ;;  %v543_v13 = vld [vmem:[%s2083_s20 + $0x18] sm:$0xf]  ;;  %v394_v19 = vrot.slane %v392_v8, 5 }
  0x2e   : > { %1342 = vmatmul.bf16.vlgmr.msra.gmra.mxu2 %v1589_v49  ;;  %v385_v12 = vsel %vm2127_vm2, %v380_v4, %v384_v7  ;;  %v544_v14 = vld [vmem:[%s2083_s20 + $0x1c] sm:$0xf]  ;;  %v398_v15 = vrot.slane %v396_v9, 4  ;;  %v1845_v17 = vld [vmem:[#allocation2 + $0x2c] sm:$0xf0]  ;;  %v632_v21 = vor.u32 %v631_v11, %v627_v54 }
  0x2f   : > { %1391 = vmatmul.bf16.vlgmr.msra.gmra.mxu3 %v1593_v3  ;;  %v389_v18 = vor.u32 %v388_v10, %v384_v7  ;;  %511 = vst [vmem:[#allocation2 + $0x44] sm:$0xf] %v385_v12  ;;  %v576_v20 = vld [vmem:[%s2083_s20 + $0x1c] sm:$0xf]  ;;  %v1843_v22 = vld [vmem:[#allocation2 + $0x24] sm:$0xf]  ;;  %v1597_v38 = vor.u32 %v1845_v17, %v1596_v16 }
  0x30   : > { %v1604_v23 = vld [vmem:[#allocation2 + $0x28] sm:$0xf]  ;;  %557 = vst [vmem:[#allocation2 + $0x48] sm:$0xf] %v543_v13  ;;  %v577_v24 = vld [vmem:[%s2083_s20 + $0x20] sm:$0xf]  ;;  %v399_v28 = vor.u32 %v398_v15, %v394_v19 }
  0x31   : > { %v1846_v25 = vld [vmem:[#allocation2 + $0x34] sm:$0xf0]  ;;  %v390_v26 = vrot.slane %v389_v18, 4  ;;  %558 = vst [vmem:[#allocation2 + $0x58] sm:$0xf] %v544_v14  ;;  %v633_v27 = vrot.slane %v632_v21, 4 }
  0x32   : > { %v1598_v29 = vld [vmem:[#allocation2 + $0x30] sm:$0xf0]  ;;  %v635_v30 = vshll.u32 %v576_v20, 16  ;;  %v639_v31 = vshrl.u32 %v576_v20, 16  ;;  %v645_v32 = vshll.u32 %v577_v24, 16  ;;  %v649_v33 = vshrl.u32 %v577_v24, 16 }
  0x33   : > { %v395_v34 = vsel %vm2127_vm2, %v390_v26, %v394_v19  ;;  %v287_v35 = vld [vmem:[%s2083_s20 + $0x18] sm:$0xf]  ;;  %v288_v36 = vld [vmem:[%s2083_s20 + $0x1c] sm:$0xf]  ;;  %v1844_v39 = vld [vmem:[#allocation2 + $0x2c] sm:$0xf]  ;;  %v1601_v42 = vor.u32 %v1843_v22, %v1598_v29  ;;  %v1605_v43 = vor.u32 %v1846_v25, %v1604_v23 }
  0x34   : > { %v320_v37 = vld [vmem:[%s2083_s20 + $0x1c] sm:$0xf]  ;;  %512 = vst [vmem:[#allocation2 + $0x54] sm:$0xf] %v395_v34  ;;  %v637_v40 = vrot.slane %v635_v30, 5  ;;  %v641_v41 = vrot.slane %v639_v31, 4 }
  0x35   : > { %v647_v44 = vrot.slane %v645_v32, 5  ;;  %303 = vst [vmem:[#allocation2 + $0x60] sm:$0xf] %v287_v35  ;;  %v321_v45 = vld [vmem:[%s2083_s20 + $0x20] sm:$0xf]  ;;  %v400_v46 = vrot.slane %v399_v28, 4 }
  0x36   : > { %v1606_v47 = vld [vmem:[#allocation2 + $0x38] sm:$0xf0]  ;;  %v638_v49 = vsel %vm2127_vm2, %v633_v27, %v637_v40  ;;  %v642_v50 = vor.u32 %v641_v41, %v637_v40  ;;  %304 = vst [vmem:[#allocation2 + $0x70] sm:$0xf] %v288_v36  ;;  %v402_v51 = vshll.u32 %v320_v37, 16  ;;  %v406_v52 = vshrl.u32 %v320_v37, 16 }
  0x37   : > { %742 = vst [vmem:[#allocation2 + $0x4c] sm:$0xf] %v638_v49  ;;  %v412_v53 = vshll.u32 %v321_v45, 16  ;;  %v651_v54 = vrot.slane %v649_v33, 4  ;;  %v1609_v58 = vor.u32 %v1844_v39, %v1606_v47  ;;  %v545_v60 = vld [vmem:[%s2083_s20 + $0x20] sm:$0xf] }
  0x38   : > { %v643_v55 = vrot.slane %v642_v50, 4  ;;  %v404_v56 = vrot.slane %v402_v51, 5  ;;  %v408_v57 = vrot.slane %v406_v52, 4  ;;  %v546_v61 = vld [vmem:[%s2083_s20 + $0x24] sm:$0xf]  ;;  %v416_v4 = vshrl.u32 %v321_v45, 16 }
  0x39   : > { %v414_v59 = vrot.slane %v412_v53, 5  ;;  %v652_v62 = vor.u32 %v651_v54, %v647_v44  ;;  %559 = vst [vmem:[#allocation2 + $0x68] sm:$0xf] %v545_v60  ;;  %v578_v2 = vld [vmem:[%s2083_s20 + $0x24] sm:$0xf] }
  0x3a   : > { %v648_v63 = vsel %vm2127_vm2, %v643_v55, %v647_v44  ;;  %v405_v0 = vsel %vm2127_vm2, %v400_v46, %v404_v56  ;;  %v409_v1 = vor.u32 %v408_v57, %v404_v56  ;;  %v579_v3 = vld [vmem:[%s2083_s20 + $0x28] sm:$0xf]  ;;  %v655_v6 = vshll.u32 %v578_v2, 16  ;;  %560 = vst [vmem:[#allocation2 + $0x78] sm:$0xf] %v546_v61 }
  0x3b   : > { %743 = vst [vmem:[#allocation2 + $0x5c] sm:$0xf] %v648_v63  ;;  %v653_v5 = vrot.slane %v652_v62, 4  ;;  %v659_v8 = vshrl.u32 %v578_v2, 16  ;;  %v665_v10 = vshll.u32 %v579_v3, 16  ;;  %v669_v13 = vshrl.u32 %v579_v3, 16 }
  0x3c   : > { %1249 = vmatmul.bf16.gmra.mxu0 %v1597_v38  ;;  %v410_v7 = vrot.slane %v409_v1, 4  ;;  %513 = vst [vmem:[#allocation2 + $0x64] sm:$0xf] %v405_v0  ;;  %v657_v9 = vrot.slane %v655_v6, 5  ;;  %v289_v14 = vld [vmem:[%s2083_s20 + $0x20] sm:$0xf] }
  0x3d   : > { %1298 = vmatmul.bf16.gmra.mxu1 %v1601_v42  ;;  %v661_v12 = vrot.slane %v659_v8, 4  ;;  %v667_v16 = vrot.slane %v665_v10, 5  ;;  %v290_v17 = vld [vmem:[%s2083_s20 + $0x24] sm:$0xf]  ;;  %v418_v18 = vrot.slane %v416_v4, 4  ;;  %v671_v41 = vrot.slane %v669_v13, 4 }
  0x3e   : > { %1347 = vmatmul.bf16.gmra.mxu2 %v1605_v43  ;;  %v415_v11 = vsel %vm2127_vm2, %v410_v7, %v414_v59  ;;  %v658_v15 = vsel %vm2127_vm2, %v653_v5, %v657_v9  ;;  %v1612_v19 = vld [vmem:[#allocation2 + $0x40] sm:$0xf]  ;;  %v1849_v20 = vld [vmem:[#allocation2 + $0x4c] sm:$0xf0]  ;;  %v1847_v21 = vld [vmem:[#allocation2 + $0x44] sm:$0xf] }
  0x3f   : > { %1396 = vmatmul.bf16.gmra.mxu3 %v1609_v58  ;;  %514 = vst [vmem:[#allocation2 + $0x74] sm:$0xf] %v415_v11  ;;  %v662_v22 = vor.u32 %v661_v12, %v657_v9  ;;  %v322_v23 = vld [vmem:[%s2083_s20 + $0x24] sm:$0xf]  ;;  %v323_v24 = vld [vmem:[%s2083_s20 + $0x28] sm:$0xf]  ;;  %v419_v27 = vor.u32 %v418_v18, %v414_v59  ;;  %v1613_v42 = vor.u32 %v1849_v20, %v1612_v19 }
  0x40   : > { %744 = vst [vmem:[#allocation2 + $0x6c] sm:$0xf] %v658_v15  ;;  %v1620_v25 = vld [vmem:[#allocation2 + $0x48] sm:$0xf]  ;;  %v1850_v26 = vld [vmem:[#allocation2 + $0x54] sm:$0xf0]  ;;  %v672_v51 = vor.u32 %v671_v41, %v667_v16 }
  0x41   : > { %305 = vst [vmem:[#allocation2 + $0x80] sm:$0xf] %v289_v14  ;;  %v422_v28 = vshll.u32 %v322_v23, 16  ;;  %v426_v29 = vshrl.u32 %v322_v23, 16  ;;  %v1614_v30 = vld [vmem:[#allocation2 + $0x50] sm:$0xf0]  ;;  %v1621_v49 = vor.u32 %v1850_v26, %v1620_v25 }
  0x42   : > { %v663_v31 = vrot.slane %v662_v22, 4  ;;  %306 = vst [vmem:[#allocation2 + $0x90] sm:$0xf] %v290_v17  ;;  %v432_v32 = vshll.u32 %v323_v24, 16  ;;  %v1848_v33 = vld [vmem:[#allocation2 + $0x4c] sm:$0xf]  ;;  %v1617_v43 = vor.u32 %v1847_v21, %v1614_v30 }
  0x43   : > { %v420_v34 = vrot.slane %v419_v27, 4  ;;  %v424_v35 = vrot.slane %v422_v28, 5  ;;  %v428_v36 = vrot.slane %v426_v29, 4  ;;  %v1622_v37 = vld [vmem:[#allocation2 + $0x58] sm:$0xf0]  ;;  %v673_v55 = vrot.slane %v672_v51, 4 }
  0x44   : > { %v668_v38 = vsel %vm2127_vm2, %v663_v31, %v667_v16  ;;  %v434_v39 = vrot.slane %v432_v32, 5  ;;  %v547_v40 = vld [vmem:[%s2083_s20 + $0x28] sm:$0xf]  ;;  %v548_v46 = vld [vmem:[%s2083_s20 + $0x2c] sm:$0xf]  ;;  %v1625_v54 = vor.u32 %v1848_v33, %v1622_v37  ;;  %v436_v58 = vshrl.u32 %v323_v24, 16 }
  0x45   : > { %745 = vst [vmem:[#allocation2 + $0x7c] sm:$0xf] %v668_v38  ;;  %v425_v44 = vsel %vm2127_vm2, %v420_v34, %v424_v35  ;;  %v429_v45 = vor.u32 %v428_v36, %v424_v35  ;;  %v580_v47 = vld [vmem:[%s2083_s20 + $0x2c] sm:$0xf]  ;;  %v581_v50 = vld [vmem:[%s2083_s20 + $0x30] sm:$0xf] }
  0x46   : > { %515 = vst [vmem:[#allocation2 + $0x84] sm:$0xf] %v425_v44  ;;  %v675_v53 = vshll.u32 %v580_v47, 16  ;;  %v679_v56 = vshrl.u32 %v580_v47, 16  ;;  %v685_v60 = vshll.u32 %v581_v50, 16  ;;  %v689_v62 = vshrl.u32 %v581_v50, 16 }
  0x47   : > { %v430_v52 = vrot.slane %v429_v45, 4  ;;  %561 = vst [vmem:[#allocation2 + $0x88] sm:$0xf] %v547_v40  ;;  %v324_v63 = vld [vmem:[%s2083_s20 + $0x2c] sm:$0xf]  ;;  %v438_v4 = vrot.slane %v436_v58, 4 }
  0x48   : > { %562 = vst [vmem:[#allocation2 + $0x98] sm:$0xf] %v548_v46  ;;  %v677_v59 = vrot.slane %v675_v53, 5  ;;  %v681_v61 = vrot.slane %v679_v56, 4  ;;  %v687_v1 = vrot.slane %v685_v60, 5  ;;  %v442_v2 = vshll.u32 %v324_v63, 16 }
  0x49   : > { %v435_v57 = vsel %vm2127_vm2, %v430_v52, %v434_v39  ;;  %v446_v5 = vshrl.u32 %v324_v63, 16  ;;  %v691_v6 = vrot.slane %v689_v62, 4  ;;  %v291_v7 = vld [vmem:[%s2083_s20 + $0x28] sm:$0xf]  ;;  %v292_v8 = vld [vmem:[%s2083_s20 + $0x2c] sm:$0xf]  ;;  %v439_v10 = vor.u32 %v438_v4, %v434_v39 }
  0x4a   : > { %516 = vst [vmem:[#allocation2 + $0x94] sm:$0xf] %v435_v57  ;;  %v678_v0 = vsel %vm2127_vm2, %v673_v55, %v677_v59  ;;  %v682_v3 = vor.u32 %v681_v61, %v677_v59  ;;  %v444_v11 = vrot.slane %v442_v2, 5  ;;  %v2239_v13 = vld [vmem:[%s2083_s20 + $0x30] sm:$0xf] }
  0x4b   : > { %746 = vst [vmem:[#allocation2 + $0x8c] sm:$0xf] %v678_v0  ;;  %v692_v12 = vor.u32 %v691_v6, %v687_v1  ;;  %v582_v14 = vld [vmem:[%s2083_s20 + $0x34] sm:$0xf]  ;;  %v1628_v15 = vld [vmem:[#allocation2 + $0x60] sm:$0xf] }
  0x4c   : > { %1254 = vmatmul.bf16.gmra.mxu0 %v1613_v42  ;;  %v683_v9 = vrot.slane %v682_v3, 4  ;;  %307 = vst [vmem:[#allocation2 + $0xa0] sm:$0xf] %v291_v7  ;;  %v1853_v16 = vld [vmem:[#allocation2 + $0x6c] sm:$0xf0]  ;;  %v440_v20 = vrot.slane %v439_v10, 4 }
  0x4d   : > { %1303 = vmatmul.bf16.gmra.mxu1 %v1617_v43  ;;  %308 = vst [vmem:[#allocation2 + $0xb0] sm:$0xf] %v292_v8  ;;  %v1851_v17 = vld [vmem:[#allocation2 + $0x64] sm:$0xf]  ;;  %v1630_v18 = vld [vmem:[#allocation2 + $0x70] sm:$0xf0]  ;;  %v1629_v39 = vor.u32 %v1853_v16, %v1628_v15 }
  0x4e   : > { %1352 = vmatmul.bf16.gmra.mxu2 %v1621_v49  ;;  %v688_v19 = vsel %vm2127_vm2, %v683_v9, %v687_v1  ;;  %v448_v21 = vrot.slane %v446_v5, 4  ;;  %v2245_v22 = vld [vmem:[%s2083_s20 + $0x38] sm:$0xf]  ;;  %v1636_v23 = vld [vmem:[#allocation2 + $0x68] sm:$0xf]  ;;  %v452_v24 = vshll.u32 %v2239_v13, 16  ;;  %v445_v26 = vsel %vm2127_vm2, %v440_v20, %v444_v11 }
  0x4f   : > { %1401 = vmatmul.bf16.gmra.mxu3 %v1625_v54  ;;  %747 = vst [vmem:[#allocation2 + $0x9c] sm:$0xf] %v688_v19  ;;  %v584_v25 = vld [vmem:[%s2083_s20 + $0x3c] sm:$0xf]  ;;  %v549_v28 = vld [vmem:[%s2083_s20 + $0x30] sm:$0xf]  ;;  %v1633_v40 = vor.u32 %v1851_v17, %v1630_v18 }
  0x50   : > { %v449_v27 = vor.u32 %v448_v21, %v444_v11  ;;  %v550_v29 = vld [vmem:[%s2083_s20 + $0x34] sm:$0xf]  ;;  %v693_v30 = vrot.slane %v692_v12, 4  ;;  %v695_v31 = vshll.u32 %v582_v14, 16  ;;  %v1854_v32 = vld [vmem:[#allocation2 + $0x74] sm:$0xf0] }
  0x51   : > { %v454_v33 = vrot.slane %v452_v24, 5  ;;  %517 = vst [vmem:[#allocation2 + $0xa4] sm:$0xf] %v445_v26  ;;  %v699_v34 = vshrl.u32 %v582_v14, 16  ;;  %v705_v37 = vshll.u32 %v2245_v22, 16  ;;  %v715_v38 = vshll.u32 %v584_v25, 16 }
  0x52   : > { %v450_v35 = vrot.slane %v449_v27, 4  ;;  %563 = vst [vmem:[#allocation2 + $0xa8] sm:$0xf] %v549_v28  ;;  %v697_v36 = vrot.slane %v695_v31, 5  ;;  %v719_v42 = vshrl.u32 %v584_v25, 16  ;;  %v1637_v43 = vor.u32 %v1854_v32, %v1636_v23 }
  0x53   : > { %564 = vst [vmem:[#allocation2 + $0xb8] sm:$0xf] %v550_v29  ;;  %v701_v41 = vrot.slane %v699_v34, 4  ;;  %v1852_v44 = vld [vmem:[#allocation2 + $0x6c] sm:$0xf]  ;;  %v2258_v49 = vrot.slane %v715_v38, 5 }
  0x54   : > { %v1638_v45 = vld [vmem:[#allocation2 + $0x78] sm:$0xf0]  ;;  %v455_v46 = vsel %vm2127_vm2, %v450_v35, %v454_v33  ;;  %v698_v47 = vsel %vm2127_vm2, %v693_v30, %v697_v36  ;;  %v707_v51 = vrot.slane %v705_v37, 5  ;;  %v721_v52 = vrot.slane %v719_v42, 4  ;;  %v326_v56 = vld [vmem:[%s2083_s20 + $0x34] sm:$0xf] }
  0x55   : > { %518 = vst [vmem:[#allocation2 + $0xb4] sm:$0xf] %v455_v46  ;;  %v702_v50 = vor.u32 %v701_v41, %v697_v36  ;;  %v1641_v53 = vor.u32 %v1852_v44, %v1638_v45  ;;  %v456_v54 = vshrl.u32 %v2239_v13, 16  ;;  %v462_v58 = vshll.u32 %v326_v56, 16  ;;  %v751_v61 = vld [vmem:[#allocation2 + $0xdc] sm:$0xf] }
  0x56   : > { %748 = vst [vmem:[#allocation2 + $0xac] sm:$0xf] %v698_v47  ;;  %v722_v57 = vor.u32 %v721_v52, %v2258_v49  ;;  %v466_v59 = vshrl.u32 %v326_v56, 16  ;;  %v709_v63 = vshrl.u32 %v2245_v22, 16  ;;  %v293_v3 = vld [vmem:[%s2083_s20 + $0x30] sm:$0xf] }
  0x57   : > { %v703_v55 = vrot.slane %v702_v50, 4  ;;  %v458_v1 = vrot.slane %v456_v54, 4  ;;  %v464_v2 = vrot.slane %v462_v58, 5  ;;  %v294_v4 = vld [vmem:[%s2083_s20 + $0x34] sm:$0xf] }
  0x58   : > { %v723_v0 = vrot.slane %v722_v57, 4  ;;  %v2276_v5 = vld [vmem:[%s2083_s20 + $0x38] sm:$0xf]  ;;  %309 = vst [vmem:[#allocation2 + $0xc0] sm:$0xf] %v293_v3  ;;  %v468_v8 = vrot.slane %v466_v59, 4 }
  0x59   : > { %v708_v62 = vsel %vm2127_vm2, %v703_v55, %v707_v51  ;;  %v459_v7 = vor.u32 %v458_v1, %v454_v33  ;;  %v472_v9 = vshll.u32 %v2276_v5, 16  ;;  %v1644_v10 = vld [vmem:[#allocation2 + $0x80] sm:$0xf]  ;;  %v1857_v11 = vld [vmem:[#allocation2 + $0x8c] sm:$0xf0]  ;;  %v711_v12 = vrot.slane %v709_v63, 4 }
  0x5a   : > { %749 = vst [vmem:[#allocation2 + $0xbc] sm:$0xf] %v708_v62  ;;  %v752_v6 = vsel %vm2264_vm4, %v723_v0, %v751_v61  ;;  %v1855_v13 = vld [vmem:[#allocation2 + $0x84] sm:$0xf]  ;;  %v1646_v14 = vld [vmem:[#allocation2 + $0x90] sm:$0xf0]  ;;  %v469_v16 = vor.u32 %v468_v8, %v464_v2  ;;  %v1645_v30 = vor.u32 %v1857_v11, %v1644_v10 }
  0x5b   : > { %310 = vst [vmem:[#allocation2 + $0xd0] sm:$0xf] %v294_v4  ;;  %v460_v15 = vrot.slane %v459_v7, 4  ;;  %v2286_v17 = vrot.slane %v472_v9, 5  ;;  %v1652_v18 = vld [vmem:[#allocation2 + $0x88] sm:$0xf]  ;;  %v712_v20 = vor.u32 %v711_v12, %v707_v51  ;;  %v1649_v35 = vor.u32 %v1855_v13, %v1646_v14 }
  0x5c   : > { %1259 = vmatmul.bf16.gmra.mxu0 %v1629_v39  ;;  %753 = vst [vmem:[#allocation2 + $0xdc] sm:$0xf] %v752_v6  ;;  %v1858_v19 = vld [vmem:[#allocation2 + $0x94] sm:$0xf0]  ;;  %v754_v21 = vld [vmem:[%s2284_s5] sm:$0xf] }
  0x5d   : > { %1308 = vmatmul.bf16.gmra.mxu1 %v1633_v40  ;;  %v328_v22 = vld [vmem:[%s2083_s20 + $0x3c] sm:$0xf]  ;;  %v465_v23 = vsel %vm2127_vm2, %v460_v15, %v464_v2  ;;  %v470_v24 = vrot.slane %v469_v16, 4  ;;  %v551_v25 = vld [vmem:[%s2083_s20 + $0x38] sm:$0xf]  ;;  %v757_v26 = vshll.u32 %v754_v21, 16  ;;  %v1653_v41 = vor.u32 %v1858_v19, %v1652_v18 }
  0x5e   : > { %1357 = vmatmul.bf16.gmra.mxu2 %v1637_v43  ;;  %519 = vst [vmem:[#allocation2 + $0xc4] sm:$0xf] %v465_v23  ;;  %v552_v27 = vld [vmem:[%s2083_s20 + $0x3c] sm:$0xf]  ;;  %v713_v28 = vrot.slane %v712_v20, 4  ;;  %v482_v29 = vshll.u32 %v328_v22, 16 }
  0x5f   : > { %1406 = vmatmul.bf16.gmra.mxu3 %v1641_v53  ;;  %v475_v31 = vsel %vm2127_vm2, %v470_v24, %v2286_v17  ;;  %565 = vst [vmem:[#allocation2 + $0xc8] sm:$0xf] %v551_v25  ;;  %v759_v32 = vrot.slane %v757_v26, 5  ;;  %v486_v33 = vshrl.u32 %v328_v22, 16  ;;  %v755_v34 = vld [vmem:[%s2284_s5 + $0x4] sm:$0xf] }
  0x60   : > { %v1856_v36 = vld [vmem:[#allocation2 + $0x8c] sm:$0xf]  ;;  %520 = vst [vmem:[#allocation2 + $0xd4] sm:$0xf] %v475_v31  ;;  %v718_v38 = vsel %vm2127_vm2, %v713_v28, %v2258_v49  ;;  %v484_v39 = vrot.slane %v482_v29, 5  ;;  %v766_v40 = vshll.u32 %v755_v34, 16 }
  0x61   : > { %v1654_v42 = vld [vmem:[#allocation2 + $0x98] sm:$0xf0]  ;;  %566 = vst [vmem:[#allocation2 + $0xd8] sm:$0xf] %v552_v27  ;;  %v488_v43 = vrot.slane %v486_v33, 4  ;;  %v770_v44 = vshrl.u32 %v755_v34, 16 }
  0x62   : > { %750 = vst [vmem:[#allocation2 + $0xcc] sm:$0xf] %v718_v38  ;;  %v768_v46 = vrot.slane %v766_v40, 5  ;;  %v1657_v49 = vor.u32 %v1856_v36, %v1654_v42  ;;  %v476_v52 = vshrl.u32 %v2276_v5, 16  ;;  %v524_v54 = vld [vmem:[#allocation2 + $0xf4] sm:$0xf] }
  0x63   : > { %v778_v45 = vld [vmem:[#allocation2 + $0xdc] sm:$0x8]  ;;  %v489_v50 = vor.u32 %v488_v43, %v484_v39  ;;  %v772_v51 = vrot.slane %v770_v44, 4  ;;  %v760_v55 = vshrl.u32 %v754_v21, 16  ;;  %v295_v62 = vld [vmem:[%s2083_s20 + $0x38] sm:$0xf] }
  0x64   : > { %v779_v47 = vsel %vm2300_vm7, %v759_v32, %v778_v45  ;;  %v782_v57 = vld [vmem:[#allocation2 + $0xfc] sm:$0xf]  ;;  %v478_v58 = vrot.slane %v476_v52, 4  ;;  %311 = vst [vmem:[#allocation2 + $0xe0] sm:$0xf] %v295_v62 }
  0x65   : > { %780 = vst [vmem:[#allocation2 + $0xdc] sm:$0x8] %v779_v47  ;;  %v490_v53 = vrot.slane %v489_v50, 4  ;;  %v773_v56 = vor.u32 %v772_v51, %v768_v46  ;;  %v762_v59 = vrot.slane %v760_v55, 4  ;;  %v296_v63 = vld [vmem:[%s2083_s20 + $0x3c] sm:$0xf] }
  0x66   : > { %v479_v1 = vor.u32 %v478_v58, %v2286_v17  ;;  %v527_v2 = vld [vmem:[%s2284_s5] sm:$0x1]  ;;  %312 = vst [vmem:[#allocation2 + $0xf0] sm:$0xf] %v296_v63  ;;  %v1861_v9 = vld [vmem:[#allocation2 + $0xac] sm:$0xf0] }
  0x67   : > { %v774_v61 = vrot.slane %v773_v56, 4  ;;  %v525_v0 = vsel %vm2264_vm4, %v490_v53, %v524_v54  ;;  %v763_v3 = vor.u32 %v762_v59, %v759_v32  ;;  %v1660_v5 = vld [vmem:[#allocation2 + $0xa0] sm:$0xf]  ;;  %v529_v7 = vshll.u32 %v527_v2, 16  ;;  %v1859_v10 = vld [vmem:[#allocation2 + $0xa4] sm:$0xf] }
  0x68   : > { %v480_v6 = vrot.slane %v479_v1, 4  ;;  %526 = vst [vmem:[#allocation2 + $0xf4] sm:$0xf] %v525_v0  ;;  %v1662_v11 = vld [vmem:[#allocation2 + $0xb0] sm:$0xf0]  ;;  %v1661_v18 = vor.u32 %v1861_v9, %v1660_v5  ;;  %s1838_s20 = sshll.u32 %s2366_s12, 6 }
  0x69   : > { %v783_v4 = vsel %vm2264_vm4, %v774_v61, %v782_v57  ;;  %v764_v8 = vrot.slane %v763_v3, 4  ;;  %v567_v13 = vld [vmem:[%s2284_s5] sm:$0xf]  ;;  %v568_v14 = vld [vmem:[%s2284_s5 + $0x4] sm:$0xf]  ;;  %v531_v17 = vrot.slane %v529_v7, 5  ;;  %v1665_v19 = vor.u32 %v1859_v10, %v1662_v11  ;;  %s2332_s24 = scalar_lea.vmem %s2354_s3, %s1838_s20 }
  0x6a   : > { %784 = vst [vmem:[#allocation2 + $0xfc] sm:$0xf] %v783_v4  ;;  %v485_v12 = vsel %vm2127_vm2, %v480_v6, %v484_v39  ;;  %v1668_v15 = vld [vmem:[#allocation2 + $0xa8] sm:$0xf]  ;;  %v1862_v16 = vld [vmem:[#allocation2 + $0xb4] sm:$0xf0] }
  0x6b   : > { %521 = vst [vmem:[#allocation2 + $0xe4] sm:$0xf] %v485_v12  ;;  %v769_v60 = vsel %vm2127_vm2, %v764_v8, %v768_v46  ;;  %v1669_v20 = vor.u32 %v1862_v16, %v1668_v15  ;;  %v1860_v21 = vld [vmem:[#allocation2 + $0xac] sm:$0xf]  ;;  %v1670_v22 = vld [vmem:[#allocation2 + $0xb8] sm:$0xf0] }
  0x6c   : > { %1264 = vmatmul.bf16.gmra.mxu0 %v1645_v30  ;;  %569 = vst [vmem:[#allocation2 + $0xe8] sm:$0xf] %v567_v13  ;;  %v1673_v26 = vor.u32 %v1860_v21, %v1670_v22  ;;  %v1676_v27 = vld [vmem:[#allocation2 + $0xc0] sm:$0xf]  ;;  %v1865_v28 = vld [vmem:[#allocation2 + $0xcc] sm:$0xf0] }
  0x6d   : > { %1313 = vmatmul.bf16.gmra.mxu1 %v1649_v35  ;;  %570 = vst [vmem:[#allocation2 + $0xf8] sm:$0xf] %v568_v14  ;;  %v1863_v29 = vld [vmem:[#allocation2 + $0xc4] sm:$0xf]  ;;  %v1678_v30 = vld [vmem:[#allocation2 + $0xd0] sm:$0xf0]  ;;  %v1677_v33 = vor.u32 %v1865_v28, %v1676_v27 }
  0x6e   : > { %1362 = vmatmul.bf16.gmra.mxu2 %v1653_v41  ;;  %781 = vst [vmem:[#allocation2 + $0xec] sm:$0xf] %v769_v60  ;;  %v1684_v31 = vld [vmem:[#allocation2 + $0xc8] sm:$0xf]  ;;  %v1866_v32 = vld [vmem:[#allocation2 + $0xd4] sm:$0xf0]  ;;  %v1681_v34 = vor.u32 %v1863_v29, %v1678_v30 }
  0x6f   : > { %1411 = vmatmul.bf16.gmra.mxu3 %v1657_v49  ;;  %v536_v23 = vld [vmem:[#allocation2 + $0xf4] sm:$0x8]  ;;  %v1685_v35 = vor.u32 %v1866_v32, %v1684_v31  ;;  %v1864_v36 = vld [vmem:[#allocation2 + $0xcc] sm:$0xf]  ;;  %v1686_v38 = vld [vmem:[#allocation2 + $0xd8] sm:$0xf0] }
  0x70   : > { %v537_v24 = vsel %vm2300_vm7, %v531_v17, %v536_v23  ;;  %v1689_v39 = vor.u32 %v1864_v36, %v1686_v38  ;;  %v1692_v37 = vld [vmem:[#allocation2 + $0xe0] sm:$0xf]  ;;  %v1869_v40 = vld [vmem:[#allocation2 + $0xec] sm:$0xf0] }
  0x71   : > { %v785_v25 = vld [vmem:[#allocation2 + $0xfc] sm:$0x8]  ;;  %538 = vst [vmem:[#allocation2 + $0xf4] sm:$0x8] %v537_v24  ;;  %v1693_v45 = vor.u32 %v1869_v40, %v1692_v37 }
  0x72   : > { %v786_v48 = vsel %vm2300_vm7, 0, %v785_v25  ;;  %v1867_v41 = vld [vmem:[#allocation2 + $0xe4] sm:$0xf] }
  0x73   : > { %787 = vst [vmem:[#allocation2 + $0xfc] sm:$0x8] %v786_v48  ;;  %v1700_v43 = vld [vmem:[#allocation2 + $0xe8] sm:$0xf] }
  0x74   : > { %v1870_v44 = vld [vmem:[#allocation2 + $0xf4] sm:$0xf0] }
  0x75   : > { %v1701_v47 = vor.u32 %v1870_v44, %v1700_v43  ;;  %v1868_v50 = vld [vmem:[#allocation2 + $0xec] sm:$0xf] }
  0x78   : > { %v1694_v42 = vld [vmem:[#allocation2 + $0xf0] sm:$0xf0] }
  0x79   : > { %v1697_v46 = vor.u32 %v1867_v41, %v1694_v42 }
  0x7a   : > { %v1702_v51 = vld [vmem:[#allocation2 + $0xf8] sm:$0xf0] }
  0x7b   : > { %v1705_v49 = vor.u32 %v1868_v50, %v1702_v51 }
  0x7c   : > { %1269 = vmatmul.bf16.gmra.mxu0 %v1661_v18 }
  0x7d   : > { %1318 = vmatmul.bf16.gmra.mxu1 %v1665_v19 }
  0x7e   : > { %1367 = vmatmul.bf16.gmra.mxu2 %v1669_v20 }
  0x7f   : > { %1416 = vmatmul.bf16.gmra.mxu3 %v1673_v26 }
  0x8c   : > { %1274 = vmatmul.bf16.gmra.mxu0 %v1677_v33 }
  0x8d   : > { %1323 = vmatmul.bf16.gmra.mxu1 %v1681_v34 }
  0x8e   : > { %1372 = vmatmul.bf16.gmra.mxu2 %v1685_v35 }
  0x8f   : > { %1421 = vmatmul.bf16.gmra.mxu3 %v1689_v39 }
  0x9c   : > { %1279 = vmatmul.bf16.gmra.mxu0 %v1693_v45 }
  0x9d   : > { %1328 = vmatmul.bf16.gmra.mxu1 %v1697_v46 }
  0x9e   : > { %1377 = vmatmul.bf16.gmra.mxu2 %v1701_v47 }
  0x9f   : > { %1426 = vmatmul.bf16.gmra.mxu3 %v1705_v49 }
  0xa9   : > { %v1245_v52 = vpop.f32.mrf.mxu0 }
  0xaa   : > { %v1294_v53 = vpop.f32.mrf.mxu1 }
  0xab   : > { %v1295_v58 = vadd.f32 %v1294_v53, %v1245_v52 }
  0xb1   : > { %v1343_v54 = vpop.f32.mrf.mxu2  ;;  %v1247_v55 = vpop.f32.mrf.mxu0 }
  0xb2   : > { %v1296_v56 = vpop.f32.mrf.mxu1  ;;  %v1392_v57 = vpop.f32.mrf.mxu3  ;;  %v1344_v61 = vadd.f32 %v1343_v54, %v1295_v58 }
  0xb3   : > { %v1297_v59 = vadd.f32 %v1296_v56, %v1247_v55 }
  0xb4   : > { %v1393_v3 = vadd.f32 %v1392_v57, %v1344_v61 }
  0xb9   : > { %v1345_v62 = vpop.f32.mrf.mxu2  ;;  %v1250_v0 = vpop.f32.mrf.mxu0 }
  0xba   : > { %v1346_v63 = vadd.f32 %v1345_v62, %v1297_v59  ;;  %v1299_v1 = vpop.f32.mrf.mxu1  ;;  %v1394_v2 = vpop.f32.mrf.mxu3 }
  0xbb   : > { %v1300_v10 = vadd.f32 %v1299_v1, %v1250_v0 }
  0xbc   : > { %v1395_v4 = vadd.f32 %v1394_v2, %v1346_v63 }
  0xbe   : > { %v1906_v5 = vpack.c.bf16 %v1395_v4, %v1393_v3 }
  0xc0   : > { %1907 = vst [vmem:[%s2332_s24] sm:$0xff] %v1906_v5  }
  0xc1   : > { %v1348_v6 = vpop.f32.mrf.mxu2  ;;  %v1252_v7 = vpop.f32.mrf.mxu0 }
  0xc2   : > { %v1301_v8 = vpop.f32.mrf.mxu1  ;;  %v1397_v9 = vpop.f32.mrf.mxu3  ;;  %v1349_v12 = vadd.f32 %v1348_v6, %v1300_v10 }
  0xc3   : > { %v1302_v11 = vadd.f32 %v1301_v8, %v1252_v7 }
  0xc4   : > { %v1398_v17 = vadd.f32 %v1397_v9, %v1349_v12 }
  0xc9   : > { %v1350_v13 = vpop.f32.mrf.mxu2  ;;  %v1255_v15 = vpop.f32.mrf.mxu0 }
  0xca   : > { %v1351_v14 = vadd.f32 %v1350_v13, %v1302_v11  ;;  %v1304_v16 = vpop.f32.mrf.mxu1  ;;  %v1399_v60 = vpop.f32.mrf.mxu3 }
  0xcb   : > { %v1305_v24 = vadd.f32 %v1304_v16, %v1255_v15 }
  0xcc   : > { %v1400_v18 = vadd.f32 %v1399_v60, %v1351_v14 }
  0xce   : > { %v1911_v19 = vpack.c.bf16 %v1400_v18, %v1398_v17 }
  0xd0   : > { %1943 = vst [vmem:[%s2332_s24 + $0x8] sm:$0xff] %v1911_v19  }
  0xd1   : > { %v1353_v20 = vpop.f32.mrf.mxu2  ;;  %v1257_v21 = vpop.f32.mrf.mxu0 }
  0xd2   : > { %v1306_v22 = vpop.f32.mrf.mxu1  ;;  %v1402_v23 = vpop.f32.mrf.mxu3  ;;  %v1354_v26 = vadd.f32 %v1353_v20, %v1305_v24 }
  0xd3   : > { %v1307_v25 = vadd.f32 %v1306_v22, %v1257_v21 }
  0xd4   : > { %v1403_v31 = vadd.f32 %v1402_v23, %v1354_v26 }
  0xd9   : > { %v1355_v48 = vpop.f32.mrf.mxu2  ;;  %v1260_v28 = vpop.f32.mrf.mxu0 }
  0xda   : > { %v1356_v27 = vadd.f32 %v1355_v48, %v1307_v25  ;;  %v1309_v29 = vpop.f32.mrf.mxu1  ;;  %v1404_v30 = vpop.f32.mrf.mxu3 }
  0xdb   : > { %v1310_v39 = vadd.f32 %v1309_v29, %v1260_v28 }
  0xdc   : > { %v1405_v32 = vadd.f32 %v1404_v30, %v1356_v27 }
  0xde   : > { %v1916_v33 = vpack.c.bf16 %v1405_v32, %v1403_v31 }
  0xe0   : > { %1944 = vst [vmem:[%s2332_s24 + $0x10] sm:$0xff] %v1916_v33  }
  0xe1   : > { %v1358_v34 = vpop.f32.mrf.mxu2  ;;  %v1262_v35 = vpop.f32.mrf.mxu0 }
  0xe2   : > { %v1311_v36 = vpop.f32.mrf.mxu1  ;;  %v1407_v38 = vpop.f32.mrf.mxu3  ;;  %v1359_v40 = vadd.f32 %v1358_v34, %v1310_v39 }
  0xe3   : > { %v1312_v37 = vadd.f32 %v1311_v36, %v1262_v35 }
  0xe4   : > { %v1408_v46 = vadd.f32 %v1407_v38, %v1359_v40 }
  0xe9   : > { %v1360_v41 = vpop.f32.mrf.mxu2  ;;  %v1265_v43 = vpop.f32.mrf.mxu0 }
  0xea   : > { %v1361_v42 = vadd.f32 %v1360_v41, %v1312_v37  ;;  %v1314_v44 = vpop.f32.mrf.mxu1  ;;  %v1409_v45 = vpop.f32.mrf.mxu3 }
  0xeb   : > { %v1315_v54 = vadd.f32 %v1314_v44, %v1265_v43 }
  0xec   : > { %v1410_v47 = vadd.f32 %v1409_v45, %v1361_v42 }
  0xee   : > { %v1921_v50 = vpack.c.bf16 %v1410_v47, %v1408_v46 }
  0xf0   : > { %1945 = vst [vmem:[%s2332_s24 + $0x18] sm:$0xff] %v1921_v50  }
  0xf1   : > { %v1363_v51 = vpop.f32.mrf.mxu2  ;;  %v1267_v49 = vpop.f32.mrf.mxu0 }
  0xf2   : > { %v1316_v52 = vpop.f32.mrf.mxu1  ;;  %v1412_v53 = vpop.f32.mrf.mxu3  ;;  %v1364_v56 = vadd.f32 %v1363_v51, %v1315_v54 }
  0xf3   : > { %v1317_v55 = vadd.f32 %v1316_v52, %v1267_v49 }
  0xf4   : > { %v1413_v63 = vadd.f32 %v1412_v53, %v1364_v56 }
  0xf9   : > { %v1365_v57 = vpop.f32.mrf.mxu2  ;;  %v1270_v59 = vpop.f32.mrf.mxu0 }
  0xfa   : > { %v1366_v58 = vadd.f32 %v1365_v57, %v1317_v55  ;;  %v1319_v61 = vpop.f32.mrf.mxu1  ;;  %v1414_v62 = vpop.f32.mrf.mxu3 }
  0xfb   : > { %v1320_v6 = vadd.f32 %v1319_v61, %v1270_v59 }
  0xfc   : > { %v1415_v0 = vadd.f32 %v1414_v62, %v1366_v58 }
  0xfe   : > { %v1926_v1 = vpack.c.bf16 %v1415_v0, %v1413_v63 }
 0x100   : > { %1946 = vst [vmem:[%s2332_s24 + $0x20] sm:$0xff] %v1926_v1  }
 0x101   : > { %v1368_v2 = vpop.f32.mrf.mxu2  ;;  %v1272_v3 = vpop.f32.mrf.mxu0 }
 0x102   : > { %v1321_v4 = vpop.f32.mrf.mxu1  ;;  %v1417_v5 = vpop.f32.mrf.mxu3  ;;  %v1369_v8 = vadd.f32 %v1368_v2, %v1320_v6 }
 0x103   : > { %v1322_v7 = vadd.f32 %v1321_v4, %v1272_v3 }
 0x104   : > { %v1418_v14 = vadd.f32 %v1417_v5, %v1369_v8 }
 0x109   : > { %v1370_v9 = vpop.f32.mrf.mxu2  ;;  %v1275_v11 = vpop.f32.mrf.mxu0 }
 0x10a   : > { %v1371_v10 = vadd.f32 %v1370_v9, %v1322_v7  ;;  %v1324_v12 = vpop.f32.mrf.mxu1  ;;  %v1419_v13 = vpop.f32.mrf.mxu3 }
 0x10b   : > { %v1325_v20 = vadd.f32 %v1324_v12, %v1275_v11 }
 0x10c   : > { %v1420_v15 = vadd.f32 %v1419_v13, %v1371_v10 }
 0x10e   : > { %v1931_v16 = vpack.c.bf16 %v1420_v15, %v1418_v14 }
 0x110   : > { %1947 = vst [vmem:[%s2332_s24 + $0x28] sm:$0xff] %v1931_v16  }
 0x111   : > { %v1373_v60 = vpop.f32.mrf.mxu2  ;;  %v1277_v17 = vpop.f32.mrf.mxu0 }
 0x112   : > { %v1326_v18 = vpop.f32.mrf.mxu1  ;;  %v1422_v19 = vpop.f32.mrf.mxu3  ;;  %v1374_v22 = vadd.f32 %v1373_v60, %v1325_v20 }
 0x113   : > { %v1327_v21 = vadd.f32 %v1326_v18, %v1277_v17 }
 0x114   : > { %v1423_v27 = vadd.f32 %v1422_v19, %v1374_v22 }
 0x119   : > { %v1375_v23 = vpop.f32.mrf.mxu2  ;;  %v1280_v25 = vpop.f32.mrf.mxu0 }
 0x11a   : > { %v1376_v24 = vadd.f32 %v1375_v23, %v1327_v21  ;;  %v1329_v26 = vpop.f32.mrf.mxu1  ;;  %v1424_v48 = vpop.f32.mrf.mxu3 }
 0x11b   : > { %v1330_v32 = vadd.f32 %v1329_v26, %v1280_v25 }
 0x11c   : > { %v1425_v28 = vadd.f32 %v1424_v48, %v1376_v24 }
 0x11e   : > { %v1936_v29 = vpack.c.bf16 %v1425_v28, %v1423_v27 }
 0x120   : > { %1948 = vst [vmem:[%s2332_s24 + $0x30] sm:$0xff] %v1936_v29  }
 0x121   : > { %v1378_v30 = vpop.f32.mrf.mxu2  ;;  %v1282_v33 = vpop.f32.mrf.mxu0 }
 0x122   : > { %v1427_v31 = vpop.f32.mrf.mxu3  ;;  %v1331_v34 = vpop.f32.mrf.mxu1  ;;  %v1379_v36 = vadd.f32 %v1378_v30, %v1330_v32 }
 0x123   : > { %v1332_v35 = vadd.f32 %v1331_v34, %v1282_v33 }
 0x124   : > { %v1428_v40 = vadd.f32 %v1427_v31, %v1379_v36 }
 0x129   : > { %v1380_v38 = vpop.f32.mrf.mxu2 }
 0x12a   : > { %v1381_v39 = vadd.f32 %v1380_v38, %v1332_v35  ;;  %v1429_v37 = vpop.f32.mrf.mxu3 }
 0x12c   : > { %v1430_v41 = vadd.f32 %v1429_v37, %v1381_v39 }
 0x12e   : > { %v1941_v42 = vpack.c.bf16 %v1430_v41, %v1428_v40 }
 0x130   : > { %1949 = vst [vmem:[%s2332_s24 + $0x38] sm:$0xff] %v1941_v42  }
 0x131 PF: > { %s13_s14 = sadd.s32 1, %s1999_s14   ;;  %s2361_s12 = smov %s1995_s13 }
 0x132   : > { %p10_p5 = scmp.ge.s32.totalorder %s13_s14, 4   ;;  %s2362_s13 = smov %s2364_s15 }
 0x134   :  { %12 = sbr.rel (!%p10_p5) target bundleno = 2 (0x2), region = 65 }

</bundles_post_ra>
